<compile_context>
chip_gen: v6e
topology: v6e:2x2x1
jax: 0.10.0
libtpu: 0.0.40
codegen_flags: <defaults>
</compile_context>

<pallas_src>
import numpy as np
import jax
import jax.numpy as jnp
from jax.experimental import pallas as pl
from jax.experimental.pallas import tpu as pltpu


def _round_up(x: int, m: int) -> int:
    return ((x + m - 1) // m) * m


def pooler_kernel(ids_ref, hs_hbm, w_ref, b_ref, o_ref, x_buf, copy_sems):
    """One grid step: gather TM selected rows from HBM, then matmul+bias+tanh.

    ids_ref : SMEM [n_pad]           int32 flat row indices (scalar prefetch)
    hs_hbm  : HBM  [B*S, 2H]         float32 hidden states (memory_space=ANY)
    w_ref   : VMEM [2H, H_pad]       bf16 weight (resident across grid)
    b_ref   : VMEM [1, H_pad]        f32 bias (resident across grid)
    o_ref   : VMEM [TM, H_pad]       f32 output tile
    x_buf   : VMEM [TM, 2H]          f32 gather scratch
    copy_sems : DMA semaphores [TM]
    """
    tile = pl.program_id(0)
    tm = x_buf.shape[0]
    base = tile * tm

    # Issue one row-DMA per selected token (gather straight from HBM).
    @pl.loop(0, tm)
    def _start(r):
        row = ids_ref[base + r]
        pltpu.make_async_copy(hs_hbm.at[row], x_buf.at[r], copy_sems.at[r]).start()

    @pl.loop(0, tm)
    def _wait(r):
        # Shape-matching descriptor just to wait on the per-row semaphore.
        pltpu.make_async_copy(hs_hbm.at[0], x_buf.at[r], copy_sems.at[r]).wait()

    # bf16 MXU matmul with f32 accumulation; f32 epilogue (bias + tanh).
    x = x_buf[...].astype(jnp.bfloat16)
    y = jnp.dot(x, w_ref[...], preferred_element_type=jnp.float32)
    y = y + b_ref[...]
    o_ref[...] = jnp.tanh(y).astype(o_ref.dtype)


def bert_pooler_pallas(hidden_states, mlm_labels, weight, bias, *, tile_m=256):
    """hidden_states: [B, S, 2H] f32, mlm_labels: [B, S] int, weight: [2H, H], bias: [H].

    Returns a padded [n_pad, H_pad] f32 array; valid region is [:num_selected, :H].
    All shapes depend only on B, S, H (static), so this traces/compiles once.
    """
    b, s, in_dim = hidden_states.shape
    h = weight.shape[1]

    max_n = b * s                                   # static upper bound on selected tokens
    tm = min(tile_m, _round_up(max_n, 8))           # rows per tile (mult. of 8, <= 256)
    n_pad = _round_up(max_n, tm)
    h_pad = _round_up(h, 128)                       # lane-dense output

    # Flattened hidden states stay in HBM (no auto-DMA); gather happens in-kernel.
    hs_flat = hidden_states.reshape(max_n, in_dim)

    # Selected flat row indices, padded with 0 to a fixed length (jittable, on device).
    mask_flat = (mlm_labels >= 0).reshape(-1)
    ids = jnp.nonzero(mask_flat, size=n_pad, fill_value=0)[0].astype(jnp.int32)

    # Weight in bf16 for the MXU, bias in f32 for the epilogue; pad H to 128 lanes.
    w_p = jnp.pad(weight.astype(jnp.bfloat16), ((0, 0), (0, h_pad - h)))
    b_p = jnp.pad(bias.astype(jnp.float32), (0, h_pad - h)).reshape(1, h_pad)

    # Explicit VMEM budget derived from the actual tile footprint (v7x-safe).
    vmem_bytes = (
        tm * in_dim * 4            # gather scratch (f32)
        + in_dim * h_pad * 2       # resident weight (bf16)
        + h_pad * 4                # resident bias (f32)
        + 2 * tm * h_pad * 4       # double-buffered output tiles (f32)
    )
    vmem_limit = int(min(max(4 * vmem_bytes, 8 << 20), 48 << 20))

    out = pl.pallas_call(
        pooler_kernel,
        out_shape=jax.ShapeDtypeStruct((n_pad, h_pad), jnp.float32),
        grid_spec=pltpu.PrefetchScalarGridSpec(
            num_scalar_prefetch=1,                  # ids -> SMEM
            grid=(n_pad // tm,),
            in_specs=[
                pl.BlockSpec(memory_space=pl.ANY),                       # hidden_states (HBM)
                pl.BlockSpec((in_dim, h_pad), lambda i, idx_ref: (0, 0)),  # weight, resident
                pl.BlockSpec((1, h_pad), lambda i, idx_ref: (0, 0)),       # bias, resident
            ],
            out_specs=pl.BlockSpec((tm, h_pad), lambda i, idx_ref: (i, 0)),
            scratch_shapes=[
                pltpu.VMEM((tm, in_dim), jnp.float32),   # gather buffer
                pltpu.SemaphoreType.DMA((tm,)),          # per-row DMA semaphores
            ],
        ),
        compiler_params=pltpu.CompilerParams(
            dimension_semantics=("parallel",),           # shard token tiles across TCs (v7x)
            vmem_limit_bytes=vmem_limit,
        ),
    )(ids, hs_flat, w_p, b_p)
    return out


def bert_pooler_forward(hidden_states, mlm_labels, weight, bias):
    """Matches PyTorch BertPooler.forward: returns [N_selected, H]."""
    out_padded = bert_pooler_pallas(hidden_states, mlm_labels, weight, bias)
    h = weight.shape[1]
    # Only the token COUNT (one scalar) leaves the device, to realize the ragged shape.
    n = int(jnp.sum(mlm_labels >= 0))
    return out_padded[:n, :h]


if __name__ == "__main__":
    B, S, H = 2, 8, 32          # hidden_size = 32  ->  dense: 2H=64 -> H=32
    key = jax.random.PRNGKey(0)
    k_hs, k_w, k_b, k_lbl = jax.random.split(key, 4)

    hidden_states = jax.random.normal(k_hs, (B, S, 2 * H), dtype=jnp.float32)
    # mlm_labels: some positions >= 0 (selected), others -100 (ignored)
    mlm_labels = jnp.where(
        jax.random.uniform(k_lbl, (B, S)) > 0.5,
        jnp.arange(B * S).reshape(B, S),
        jnp.full((B, S), -100),
    ).astype(jnp.int32)

    # Deterministic Linear(2H, H) params (PyTorch-style uniform bound 1/sqrt(fan_in)).
    bound = 1.0 / np.sqrt(2 * H)
    weight = jax.random.uniform(k_w, (2 * H, H), minval=-bound, maxval=bound,
                                dtype=jnp.float32)
    bias = jax.random.uniform(k_b, (H,), minval=-bound, maxval=bound,
                              dtype=jnp.float32)

    out = bert_pooler_forward(hidden_states, mlm_labels, weight, bias)
    out = jax.block_until_ready(out)

    # Reference check in plain numpy (f32 reference; kernel matmul runs in bf16).
    mask = np.asarray(mlm_labels) >= 0
    bi, si = np.nonzero(mask)
    sel = np.asarray(hidden_states)[bi, si]
    ref = np.tanh(sel @ np.asarray(weight) + np.asarray(bias))
    np.testing.assert_allclose(np.asarray(out), ref, rtol=2e-2, atol=2e-2)

    print("KERNEL_OK")
</pallas_src>

<mosaic_0001>
module attributes {stable_mosaic.version = 11 : i64} {
  func.func @pooler_kernel(%arg0: i32, %arg1: memref<16xi32, #tpu.memory_space<smem>>, %arg2: memref<16x64xf32, #tpu.memory_space<any>>, %arg3: memref<64x128xbf16, #tpu.memory_space<vmem>>, %arg4: memref<1x128xf32, #tpu.memory_space<vmem>>, %arg5: memref<16x128xf32, #tpu.memory_space<vmem>>, %arg6: memref<16x64xf32, #tpu.memory_space<vmem>>, %arg7: memref<16x!tpu.dma_semaphore, #tpu.memory_space<semaphore_mem>>) attributes {dimension_semantics = [#tpu.dimension_semantics<parallel>], iteration_bounds = array<i64: 1>, scalar_prefetch = 1 : i64, scratch_operands = 2 : i64, tpu.core_type = #tpu.core_type<tc>, window_params = [{}, {pipeline_mode = #tpu.pipeline_mode<synchronous>, transform_indices = @transform_1, window_bounds = array<i64: 64, 128>}, {pipeline_mode = #tpu.pipeline_mode<synchronous>, transform_indices = @transform_2, window_bounds = array<i64: 1, 128>}, {transform_indices = @transform_3, window_bounds = array<i64: 16, 128>}]} {
    %c16_i32 = arith.constant 16 : i32
    %0 = arith.muli %arg0, %c16_i32 : i32
    %c0_i32 = arith.constant 0 : i32
    %c16_i32_0 = arith.constant 16 : i32
    %1 = arith.addi %c0_i32, %c16_i32_0 : i32
    %c1_i32 = arith.constant 1 : i32
    scf.for %arg8 = %c0_i32 to %1 step %c1_i32  : i32 {
      %c1_i32_13 = arith.constant 1 : i32
      %12 = arith.muli %arg8, %c1_i32_13 : i32
      %c0_i32_14 = arith.constant 0 : i32
      %13 = arith.addi %c0_i32_14, %12 : i32
      %14 = arith.addi %0, %13 : i32
      %15 = arith.index_cast %14 : i32 to index
      %16 = memref.load %arg1[%15] : memref<16xi32, #tpu.memory_space<smem>>
      %c0_i32_15 = arith.constant 0 : i32
      %17 = tpu.memref_slice %arg2[%16, %c0_i32_15] : memref<16x64xf32, #tpu.memory_space<any>> -> memref<1x64xf32, #tpu.memory_space<any>>
      %18 = tpu.memref_squeeze %17 : memref<1x64xf32, #tpu.memory_space<any>> -> memref<64xf32, #tpu.memory_space<any>>
      %c0_i32_16 = arith.constant 0 : i32
      %19 = tpu.memref_slice %arg6[%13, %c0_i32_16] : memref<16x64xf32, #tpu.memory_space<vmem>> -> memref<1x64xf32, #tpu.memory_space<vmem>>
      %20 = tpu.memref_squeeze %19 : memref<1x64xf32, #tpu.memory_space<vmem>> -> memref<64xf32, #tpu.memory_space<vmem>>
      %21 = tpu.memref_slice %arg7[%13] : memref<16x!tpu.dma_semaphore, #tpu.memory_space<semaphore_mem>> -> memref<1x!tpu.dma_semaphore, #tpu.memory_space<semaphore_mem>>
      %22 = tpu.memref_squeeze %21 : memref<1x!tpu.dma_semaphore, #tpu.memory_space<semaphore_mem>> -> memref<!tpu.dma_semaphore, #tpu.memory_space<semaphore_mem>>
      tpu.enqueue_dma source(%18 : memref<64xf32, #tpu.memory_space<any>>) target(%20 : memref<64xf32, #tpu.memory_space<vmem>>) target_semaphore(%22 : memref<!tpu.dma_semaphore, #tpu.memory_space<semaphore_mem>>)
    }
    %c16_i32_1 = arith.constant 16 : i32
    %c0_i32_2 = arith.constant 0 : i32
    %c16_i32_3 = arith.constant 16 : i32
    %2 = arith.addi %c0_i32_2, %c16_i32_3 : i32
    %c1_i32_4 = arith.constant 1 : i32
    scf.for %arg8 = %c0_i32_2 to %2 step %c1_i32_4  : i32 {
      %c1_i32_13 = arith.constant 1 : i32
      %12 = arith.muli %arg8, %c1_i32_13 : i32
      %c0_i32_14 = arith.constant 0 : i32
      %13 = arith.addi %c0_i32_14, %12 : i32
      %c0_i32_15 = arith.constant 0 : i32
      %c0_i32_16 = arith.constant 0 : i32
      %14 = tpu.memref_slice %arg2[%c0_i32_15, %c0_i32_16] : memref<16x64xf32, #tpu.memory_space<any>> -> memref<1x64xf32, #tpu.memory_space<any>>
      %15 = tpu.memref_squeeze %14 : memref<1x64xf32, #tpu.memory_space<any>> -> memref<64xf32, #tpu.memory_space<any>>
      %c0_i32_17 = arith.constant 0 : i32
      %16 = tpu.memref_slice %arg6[%13, %c0_i32_17] : memref<16x64xf32, #tpu.memory_space<vmem>> -> memref<1x64xf32, #tpu.memory_space<vmem>>
      %17 = tpu.memref_squeeze %16 : memref<1x64xf32, #tpu.memory_space<vmem>> -> memref<64xf32, #tpu.memory_space<vmem>>
      %18 = tpu.memref_slice %arg7[%13] : memref<16x!tpu.dma_semaphore, #tpu.memory_space<semaphore_mem>> -> memref<1x!tpu.dma_semaphore, #tpu.memory_space<semaphore_mem>>
      %19 = tpu.memref_squeeze %18 : memref<1x!tpu.dma_semaphore, #tpu.memory_space<semaphore_mem>> -> memref<!tpu.dma_semaphore, #tpu.memory_space<semaphore_mem>>
      tpu.wait_dma2 semaphore(%19 : memref<!tpu.dma_semaphore, #tpu.memory_space<semaphore_mem>>) src(%15 : memref<64xf32, #tpu.memory_space<any>>) dst(%17 : memref<64xf32, #tpu.memory_space<vmem>>)
    }
    %c16_i32_5 = arith.constant 16 : i32
    %c0 = arith.constant 0 : index
    %c0_6 = arith.constant 0 : index
    %3 = vector.load %arg6[%c0, %c0_6] : memref<16x64xf32, #tpu.memory_space<vmem>>, vector<16x64xf32>
    %4 = arith.truncf %3 : vector<16x64xf32> to vector<16x64xbf16>
    %c0_7 = arith.constant 0 : index
    %c0_8 = arith.constant 0 : index
    %5 = vector.load %arg3[%c0_7, %c0_8] : memref<64x128xbf16, #tpu.memory_space<vmem>>, vector<64x128xbf16>
    %cst = arith.constant dense<0.000000e+00> : vector<16x128xf32>
    %6 = tpu.matmul %4, %5, %cst {dimension_numbers = #tpu.dot_dimension_numbers<[1], [0], [0], [1], [0, 0, 1, 1], [], []>} : vector<16x64xbf16>, vector<64x128xbf16>, vector<16x128xf32> -> vector<16x128xf32>
    %c0_9 = arith.constant 0 : index
    %c0_10 = arith.constant 0 : index
    %7 = vector.load %arg4[%c0_9, %c0_10] : memref<1x128xf32, #tpu.memory_space<vmem>>, vector<1x128xf32>
    %8 = vector.broadcast %7 : vector<1x128xf32> to vector<16x128xf32>
    %9 = arith.addf %6, %8 : vector<16x128xf32>
    %10 = math.tanh %9 : vector<16x128xf32>
    %c0_11 = arith.constant 0 : index
    %c0_12 = arith.constant 0 : index
    %11 = vector.load %arg5[%c0_11, %c0_12] : memref<16x128xf32, #tpu.memory_space<vmem>>, vector<16x128xf32>
    tpu.vector_store %arg5[%c0_11, %c0_12], %10 {strides = array<i32>} : memref<16x128xf32, #tpu.memory_space<vmem>>, vector<16x128xf32>,
    return
  }
  func.func @transform_1(%arg0: i32, %arg1: memref<16xi32, #tpu.memory_space<smem>>) -> (i32, i32) {
    %c0_i32 = arith.constant 0 : i32
    %c0_i32_0 = arith.constant 0 : i32
    %c0_i32_1 = arith.constant 0 : i32
    return %c0_i32, %c0_i32_0 : i32, i32
  }
  func.func @transform_2(%arg0: i32, %arg1: memref<16xi32, #tpu.memory_space<smem>>) -> (i32, i32) {
    %c0_i32 = arith.constant 0 : i32
    %c0_i32_0 = arith.constant 0 : i32
    %c0_i32_1 = arith.constant 0 : i32
    return %c0_i32, %c0_i32_0 : i32, i32
  }
  func.func @transform_3(%arg0: i32, %arg1: memref<16xi32, #tpu.memory_space<smem>>) -> (i32, i32) {
    %c0_i32 = arith.constant 0 : i32
    %c0_i32_0 = arith.constant 0 : i32
    return %arg0, %c0_i32 : i32, i32
  }
}

</mosaic_0001>

<bundles_post_ra>
// kernel: tpu_custom_call.1
= control target key start
LH: loop header
LB: loop body
LE: loop exit
PB: predicated region body
PF: predicated region fallthrough
CT: control target
= control target key end

     0   :  { %s467_s15 = smov [#allocation5]   ;;  %s534_s0 = inlined_call_operand.hbm [shape: s32[16], index: 0, kind: input, shape index: {}]   ;;  %s535_s1 = inlined_call_operand.hbm [shape: f32[16,64], index: 1, kind: input, shape index: {}]   ;;  %s536_s2 = inlined_call_operand.hbm [shape: bf16[64,128], index: 2, kind: input, shape index: {}]   ;;  %s537_s3 = inlined_call_operand.vmem [shape: f32[1,128], index: 3, kind: input, shape index: {}]   ;;  %s538_s4 = inlined_call_operand.hbm [shape: f32[16,128], index: 4, kind: output, shape index: {}]  }
   0x1   :  { %10 = dma.hbm_to_smem %s534_s0, 16, %s467_s15, [#allocation4] }
   0x2   :  { %451 = dma.done.wait [#allocation4], 16 }
   0x3   :  { %452 = vsyncadd [#allocation4], 4294967280 }
   0x4   :  { %12 = sfence }
   0x5   :  { %13 = vsyncpa [#allocation7], 0 }
   0x6   :  { %14 = vsyncpa [#allocation8], 0  ;;  %s468_s18 = smov [#allocation6]  }
   0x7   :  { %s20_s19 = sshll.u32 %s468_s18, 4  ;;  %s21_s19 = int_to_ptr.vmem [resolvable:$true] %s20_s19 }
   0x8   :  { %s389_s20 = scalar_lea.vmem %s21_s19, 512  ;;  %p394_p1 = scmp.lt.s32.totalorder %s21_s19, %s21_s19 }
   0x9   :  { %p390_p0 = scmp.ne.s32.totalorder %s21_s19, %s389_s20  ;;  %p395_p2 = scmp.lt.s32.totalorder %s389_s20, %s389_s20 }
   0xb   :  { %p396_p3 = por %p395_p2, %p394_p1 }
   0xd   :  { %p397_p4 = pnand %p396_p3, %p390_p0 }
   0xf   :  { %400 = shalt.err (!%p397_p4)
}
  0x10   :  { %s469_s21 = smov 64   ;;  %s470_s22 = smov 4  }
  0x11   :  { %26 = dma.hbm_to_vmem [thread:$0]  %s536_s2, 512, %s21_s19, [#allocation7], %s469_s21, %s469_s21, %s470_s22  }
  0x12   :  { %453 = dma.done.wait [#allocation7], 512  }
  0x13   :  { %454 = vsyncadd [#allocation7], 4294966784  ;;  %s508_s0 = smov 0  }
  0x14 LB: > { %s41_s25 = sld [smem:[#allocation5 + %s461_s0]]  ;;  %s44_s26 = scalar_lea.vmem [#allocation2], %s461_s0  ;;  %s461_s0 = sphi %s508_s0, %s39_s0  }
  0x15   : > { %s53_s27 = sshll.u32 %s44_s26, 4  ;;  %s45_s5 = scalar_lea.sflag [#allocation3], %s461_s0  ;;  %s54_s27 = int_to_ptr.vmem [resolvable:$true] %s53_s27 }
  0x16   : > { %s403_s9 = scalar_lea.hbm %s535_s1, 256 }
  0x1a   : > { %s300_s28 = sshll.u32 %s41_s25, 4 }
  0x1b   : > { %s43_s2 = scalar_lea.hbm %s535_s1, %s300_s28 }
  0x1c   : > { %s401_s6 = scalar_lea.hbm %s43_s2, 16  ;;  %p404_p6 = scmp.lt.s32.totalorder %s43_s2, %s535_s1 }
  0x1d   : > { %p402_p5 = scmp.ne.s32.totalorder %s43_s2, %s401_s6  ;;  %p405_p7 = scmp.lt.s32.totalorder %s403_s9, %s401_s6 }
  0x1f   : > { %p406_p8 = por %p405_p7, %p404_p6 }
  0x21   : > { %p407_p9 = pnand %p406_p8, %p402_p5 }
  0x23   : > { %410 = shalt.err (!%p407_p9)  }
  0x24   : > { %s411_s12 = scalar_lea.vmem %s54_s27, 16  ;;  %s471_s13 = smov [#allocation2]  }
  0x25   : > { %p412_p10 = scmp.ne.s32.totalorder %s54_s27, %s411_s12  ;;  %s413_s14 = sshll.u32 %s471_s13, 4  ;;  %s414_s14 = int_to_ptr.vmem [resolvable:$false] %s413_s14 }
  0x26   : > { %s415_s15 = scalar_lea.vmem %s414_s14, 256  ;;  %p416_p11 = scmp.lt.s32.totalorder %s54_s27, %s414_s14 }
  0x27   : > { %p417_p12 = scmp.lt.s32.totalorder %s415_s15, %s411_s12 }
  0x29   : > { %p418_p13 = por %p417_p12, %p416_p11 }
  0x2b   : > { %p419_p0 = pnand %p418_p13, %p412_p10 }
  0x2d   : > { %422 = shalt.err (!%p419_p0)  }
  0x2e   : > { %56 = dma.hbm_to_vmem [thread:$0]  %s43_s2, 16, %s54_s27, %s45_s5 }
  0x2f   : > { %s39_s0 = sadd.s32 1, %s461_s0  }
  0x30   : > { %p36_p1 = scmp.ge.s32.totalorder %s39_s0, 16  }
  0x31   :  { %s463_s16 = smov (%p36_p1), 0  }
  0x32   :  { %38 = sbr.rel (!%p36_p1) target bundleno = 20 (0x14), region = 69 }
  0x37 LB: > { %s63_s17 = scalar_lea.sflag [#allocation3], %s465_s16  ;;  %s465_s16 = sphi %s463_s16, %s62_s16  }
  0x38   : > { %455 = dma.done.wait %s63_s17, 16 }
  0x39   : > { %456 = vsyncadd %s63_s17, 4294967280  ;;  %s62_s16 = sadd.s32 1, %s465_s16  }
  0x3a   : > { %p59_p2 = scmp.ge.s32.totalorder %s62_s16, 16  }
  0x3b   :  { %v365_v0 = vld [vmem:[#allocation6 + $0x18] sm:$0xff] (%p59_p2)   ;;  %v472_v1 = vmov (%p59_p2), 0.0   ;;  %v366_v2 = vld [vmem:[#allocation6 + $0x10] sm:$0xff] (%p59_p2)   ;;  %vm473_vm0 = vmmov (%p59_p2), 0   ;;  %v367_v3 = vld [vmem:[#allocation6 + $0x8] sm:$0xff] (%p59_p2)   ;;  %vm108_vm1 = vcmask (%p59_p2), 523264  }
  0x3c   :  { %61 = sbr.rel (!%p59_p2) target bundleno = 55 (0x37), region = 80  ;;  %328 = vmatprep.subr.bf16.mxu0 (%p59_p2), %v472_v1  ;;  %336 = vmatprep.mubr.msk.bf16.mxu0 (%p59_p2), %vm473_vm0, %v472_v1  ;;  %v368_v4 = vld [vmem:[#allocation6] sm:$0xff] (%p59_p2)   ;;  %v66_v5 = vld [vmem:[#allocation2] sm:$0xff] (%p59_p2)  ;;  %v67_v6 = vld [vmem:[#allocation2 + $0x8] sm:$0xff] (%p59_p2)  ;;  %s474_s19 = smov (%p59_p2), [#allocation9]  }
  0x3d   :  { %329 = vmatpush3.bf16.msra.mxu0 (%p59_p2), %v365_v0  ;;  %v68_v7 = vpack.c.bf16 (%p59_p2), %v67_v6, %v66_v5  ;;  %v301_v8 = vld [vmem:[%s537_s3] ss:$0 sm:$0xff] (%p59_p2)  ;;  %s162_s20 = sshll.u32 (%p59_p2), %s474_s19, 4  ;;  %s163_s20 = int_to_ptr.vmem [resolvable:$true] %s162_s20 }
  0x3e   :  { %330 = vmatprep.subr.bf16.mxu0 (%p59_p2), %v472_v1  ;;  %s423_s21 = scalar_lea.vmem (%p59_p2), %s163_s20, 256  ;;  %p428_p4 = scmp.lt.s32.totalorder (%p59_p2), %s163_s20, %s163_s20 }
  0x3f   :  { %p424_p3 = scmp.ne.s32.totalorder (%p59_p2), %s163_s20, %s423_s21  ;;  %p429_p5 = scmp.lt.s32.totalorder (%p59_p2), %s423_s21, %s423_s21 }
  0x41   :  { %331 = vmatpush3.bf16.msra.mxu0 %v366_v2  ;;  %p430_p6 = por %p429_p5, %p428_p4 }
  0x42   :  { %332 = vmatprep.subr.bf16.mxu0 %v472_v1 }
  0x43   :  { %p431_p7 = pnand %p430_p6, %p424_p3 }
  0x45   :  { %333 = vmatpush3.bf16.msra.mxu0 %v367_v3 }
  0x46   :  { %334 = vmatprep.subr.bf16.mxu0 %v472_v1 }
  0x49   :  { %335 = vmatpush3.bf16.msra.mxu0 %v368_v4 }
  0x4c   :  { %337 = vmatmul.mubr.msk.bf16.vlgmr.msra.gmra.mxu0 %vm108_vm1, %v68_v7 }
 0x10c   :  { %v146_v9 = vpop.f32.mrf.mxu0 }
 0x10d   :  { %v147_v10 = vadd.f32 %v301_v8, %v146_v9 }
 0x10e   :  { %v338_v11 = vpop.f32.mrf.mxu0 }
 0x10f   :  { %369 = vtanh.f32 %v147_v10 }
 0x110   :  { %v149_v12 = vpop.f32.mrf.mxu0 }
 0x111   :  { %v150_v13 = vadd.f32 %v301_v8, %v149_v12 }
 0x112   :  { %v339_v14 = vpop.f32.mrf.mxu0 }
 0x113   :  { %371 = vtanh.f32 %v150_v13 }
 0x11c   :  { %v370_v15 = vpop.eup %369 }
 0x11d   :  { %155 = vst [vmem:[#allocation9] sm:$0xff] %v370_v15 }
 0x120   :  { %v372_v16 = vpop.eup %371 }
 0x121   :  { %156 = vst [vmem:[#allocation9 + $0x8] sm:$0xff] %v372_v16 }
 0x122   :  { %434 = shalt.err (!%p431_p7)
}
 0x123   :  { %s475_s3 = smov 128   ;;  %s476_s22 = smov 8  }
 0x124   :  { %168 = dma.vmem_to_hbm [thread:$0]  %s163_s20, 256, %s538_s4, [#allocation8], %s475_s3, %s475_s3, %s476_s22  }
 0x125   :  { %457 = dma.done.wait [#allocation8], 256  }
 0x126   :  { %458 = vsyncadd [#allocation8], 4294967040 }
 0x127   :  { %172 = vsyncpa [#allocation7], 1 }
 0x128   :  { %173 = vsyncpa [#allocation8], 1 }
 0x129   :  { %174 = vsyncmov [#allocation3] }
 0x12c   :  { %s175_s0 = vpop.sfrf %174 }
 0x12d   :  { %p307_p8 = scmp.ne.s32.totalorder %s175_s0, 0 }
 0x12f   :  { %179 = shalt.err (%p307_p8)  }
 0x130   :  { %181 = vsyncmov [#allocation3 + $0x1] }
 0x133   :  { %s182_s25 = vpop.sfrf %181 }
 0x134   :  { %p308_p9 = scmp.ne.s32.totalorder %s182_s25, 0 }
 0x136   :  { %186 = shalt.err (%p308_p9)  }
 0x137   :  { %188 = vsyncmov [#allocation3 + $0x2] }
 0x13a   :  { %s189_s26 = vpop.sfrf %188 }
 0x13b   :  { %p309_p10 = scmp.ne.s32.totalorder %s189_s26, 0 }
 0x13d   :  { %193 = shalt.err (%p309_p10)  }
 0x13e   :  { %195 = vsyncmov [#allocation3 + $0x3] }
 0x141   :  { %s196_s27 = vpop.sfrf %195 }
 0x142   :  { %p310_p11 = scmp.ne.s32.totalorder %s196_s27, 0 }
 0x144   :  { %200 = shalt.err (%p310_p11)  }
 0x145   :  { %202 = vsyncmov [#allocation3 + $0x4] }
 0x148   :  { %s203_s4 = vpop.sfrf %202 }
 0x149   :  { %p311_p12 = scmp.ne.s32.totalorder %s203_s4, 0 }
 0x14b   :  { %207 = shalt.err (%p311_p12)  }
 0x14c   :  { %209 = vsyncmov [#allocation3 + $0x5] }
 0x14f   :  { %s210_s28 = vpop.sfrf %209 }
 0x150   :  { %p312_p13 = scmp.ne.s32.totalorder %s210_s28, 0 }
 0x152   :  { %214 = shalt.err (%p312_p13)  }
 0x153   :  { %216 = vsyncmov [#allocation3 + $0x6] }
 0x156   :  { %s217_s29 = vpop.sfrf %216 }
 0x157   :  { %p313_p0 = scmp.ne.s32.totalorder %s217_s29, 0 }
 0x159   :  { %221 = shalt.err (%p313_p0)  }
 0x15a   :  { %223 = vsyncmov [#allocation3 + $0x7] }
 0x15d   :  { %s224_s30 = vpop.sfrf %223 }
 0x15e   :  { %p314_p1 = scmp.ne.s32.totalorder %s224_s30, 0 }
 0x160   :  { %228 = shalt.err (%p314_p1)  }
 0x161   :  { %230 = vsyncmov [#allocation3 + $0x8] }
 0x164   :  { %s231_s2 = vpop.sfrf %230 }
 0x165   :  { %p315_p2 = scmp.ne.s32.totalorder %s231_s2, 0 }
 0x167   :  { %235 = shalt.err (%p315_p2)  }
 0x168   :  { %237 = vsyncmov [#allocation3 + $0x9] }
 0x16b   :  { %s238_s5 = vpop.sfrf %237 }
 0x16c   :  { %p316_p3 = scmp.ne.s32.totalorder %s238_s5, 0 }
 0x16e   :  { %242 = shalt.err (%p316_p3)  }
 0x16f   :  { %244 = vsyncmov [#allocation3 + $0xa] }
 0x172   :  { %s245_s6 = vpop.sfrf %244 }
 0x173   :  { %p317_p4 = scmp.ne.s32.totalorder %s245_s6, 0 }
 0x175   :  { %249 = shalt.err (%p317_p4)  }
 0x176   :  { %251 = vsyncmov [#allocation3 + $0xb] }
 0x179   :  { %s252_s7 = vpop.sfrf %251 }
 0x17a   :  { %p318_p5 = scmp.ne.s32.totalorder %s252_s7, 0 }
 0x17c   :  { %256 = shalt.err (%p318_p5)  }
 0x17d   :  { %258 = vsyncmov [#allocation3 + $0xc] }
 0x180   :  { %s259_s8 = vpop.sfrf %258 }
 0x181   :  { %p319_p6 = scmp.ne.s32.totalorder %s259_s8, 0 }
 0x183   :  { %263 = shalt.err (%p319_p6)  }
 0x184   :  { %265 = vsyncmov [#allocation3 + $0xd] }
 0x187   :  { %s266_s9 = vpop.sfrf %265 }
 0x188   :  { %p320_p7 = scmp.ne.s32.totalorder %s266_s9, 0 }
 0x18a   :  { %270 = shalt.err (%p320_p7)  }
 0x18b   :  { %272 = vsyncmov [#allocation3 + $0xe] }
 0x18e   :  { %s273_s10 = vpop.sfrf %272 }
 0x18f   :  { %p321_p8 = scmp.ne.s32.totalorder %s273_s10, 0 }
 0x191   :  { %277 = shalt.err (%p321_p8)  }
 0x192   :  { %279 = vsyncmov [#allocation3 + $0xf] }
 0x195   :  { %s280_s11 = vpop.sfrf %279 }
 0x196   :  { %p322_p9 = scmp.ne.s32.totalorder %s280_s11, 0 }
 0x198   :  { %284 = shalt.err (%p322_p9)  }

</bundles_post_ra>
